<compile_context>
chip_gen: v6e
topology: v6e:2x2x1
jax: 0.10.0
libtpu: 0.0.40
codegen_flags: <defaults>
</compile_context>

<pallas_src>
import math
from functools import partial

import numpy as np
import jax
import jax.numpy as jnp
from jax.experimental import pallas as pl
from jax.experimental.pallas import tpu as pltpu


# ------------------------------ Pallas kernel ------------------------------

def _batched_local_attn_kernel(q_ref, k_ref, v_ref, o_ref, *, scale, compute_dtype):
    # Block shapes:
    #   q_ref: (Bt, S, Tw, D)   k_ref/v_ref: (Bt, S, W, D)   o_ref: (Bt, S, Tw, D)
    bt, S, Tw, D = q_ref.shape
    W = k_ref.shape[2]

    # Fold (Bt, S) -> (Bt*S): free leading-dim reshape; gives one dense stream
    # of back-to-back per-position matmuls on the MXU.
    q = q_ref[...].reshape(bt * S, Tw, D)
    k = k_ref[...].reshape(bt * S, W, D)
    v = v_ref[...].reshape(bt * S, W, D)

    if q.dtype != compute_dtype:
        q = q.astype(compute_dtype)
        k = k.astype(compute_dtype)
    if v.dtype != compute_dtype:
        v = v.astype(compute_dtype)

    # scores[s, i, j] = sum_d q[s, i, d] * k[s, j, d]   (bf16 MXU, f32 accumulate)
    scores = jnp.einsum(
        "sid,sjd->sij", q, k, preferred_element_type=jnp.float32
    ) * scale                                             # (Bt*S, Tw, W) f32

    # torch.nn.Softmax(dim=1): normalize across the *sequence* axis, per batch
    # element, in f32.  Un-fold so batches are never mixed.
    scores = scores.reshape(bt, S, Tw, W)
    m = jnp.max(scores, axis=1, keepdims=True)
    p = jnp.exp(scores - m)
    denom = jnp.sum(p, axis=1, keepdims=True)
    p = p * pl.reciprocal(denom, approx=True)             # EUP slot, frees VPU

    # A[s, i, d] = sum_j p[s, i, j] * v[s, j, d]   (bf16 MXU, f32 accumulate)
    p = p.reshape(bt * S, Tw, W).astype(compute_dtype)
    a = jnp.einsum("sij,sjd->sid", p, v, preferred_element_type=jnp.float32)

    # Lane-dense (D on the 128-lane axis) full-width stores.
    o_ref[...] = a.reshape(bt, S, Tw, D).astype(o_ref.dtype)


# -------------------------------- wrapper ----------------------------------

def _block_vmem_bytes(batch_tile, S, w_tile, W, D, itemsize):
    q_b = batch_tile * S * w_tile * D * itemsize
    kv_b = 2 * batch_tile * S * W * D * itemsize
    o_b = batch_tile * S * w_tile * D * itemsize
    return q_b + kv_b + o_b


def batched_local_attention_pallas(q, k, v, *, w_tile=None, batch_tile=None,
                                   prefer_bf16=True, interpret=False):
    """Forward pass of BatchedLocalAttention. q/k/v: (B, S, W, D)."""
    B, S, W, D = q.shape
    assert k.shape == (B, S, W, D) and v.shape == (B, S, W, D)

    in_dtype = q.dtype
    in_itemsize = jnp.dtype(in_dtype).itemsize
    # Both matmuls on the bf16 MXU path when the inputs are f32 (tolerance
    # permitting); softmax stays in f32 regardless.
    compute_dtype = (jnp.bfloat16
                     if (prefer_bf16 and in_dtype == jnp.float32) else in_dtype)

    # (8,128) BlockSpec tiling rule for the trailing (w, D) block dims:
    # sublane granularity is 8 for 4-byte, 16 for 2-byte, 32 for 1-byte dtypes.
    min_sublane = max(8, 32 // in_itemsize)

    if w_tile is None:
        w_tile = W if W <= 128 else 128
    assert W % w_tile == 0, "w_tile must divide W"
    assert (w_tile == W) or (w_tile % min_sublane == 0), (
        f"w_tile={w_tile} must equal W={W} or be a multiple of {min_sublane} "
        f"for dtype {in_dtype}")
    n_w_tiles = W // w_tile

    # ---- batch folding: fewer, fatter grid steps --------------------------
    _BLOCK_BUDGET_BYTES = 12 << 20   # per-buffer; ~24 MiB once double-buffered
    if batch_tile is None:
        batch_tile = B
        # Keep >= 2 grid points whenever possible so both v7x TensorCores get
        # work; on single-TC v5e/v6e this costs at most one extra ~0.35us step.
        if n_w_tiles == 1 and B >= 2:
            batch_tile = B // 2 if B % 2 == 0 else 1
        while (batch_tile > 1 and
               _block_vmem_bytes(batch_tile, S, w_tile, W, D, in_itemsize)
               > _BLOCK_BUDGET_BYTES):
            batch_tile = max(1, batch_tile // 2)
        while B % batch_tile:
            batch_tile -= 1
    assert B % batch_tile == 0, "batch_tile must divide B"
    n_b_tiles = B // batch_tile

    scale = 1.0 / math.sqrt(D)

    q_spec = pl.BlockSpec((batch_tile, S, w_tile, D), lambda b, w: (b, 0, w, 0))
    kv_spec = pl.BlockSpec((batch_tile, S, W, D), lambda b, w: (b, 0, 0, 0))
    o_spec = pl.BlockSpec((batch_tile, S, w_tile, D), lambda b, w: (b, 0, w, 0))

    # VMEM limit: actual double-buffered block residency + in-kernel f32
    # softmax temporaries + headroom, clamped to a v7x-safe 48 MiB.
    blk = _block_vmem_bytes(batch_tile, S, w_tile, W, D, in_itemsize)
    softmax_scratch = 4 * batch_tile * S * w_tile * W * 4   # scores/p/temps, f32
    vmem_limit = int(min(max(2 * blk + softmax_scratch + (4 << 20), 16 << 20),
                         48 << 20))

    out_itemsize = in_itemsize
    cost = pl.CostEstimate(
        flops=4 * B * S * W * W * D,                   # QK^T + PV
        transcendentals=B * S * W * W,                 # exp
        bytes_accessed=(B * S * W * D * in_itemsize                 # q read once
                        + 2 * n_w_tiles * B * S * W * D * in_itemsize  # k,v per w-tile
                        + B * S * W * D * out_itemsize),             # output
    )

    out = pl.pallas_call(
        partial(_batched_local_attn_kernel, scale=scale, compute_dtype=compute_dtype),
        grid=(n_b_tiles, n_w_tiles),
        in_specs=[q_spec, kv_spec, kv_spec],
        out_specs=o_spec,
        out_shape=jax.ShapeDtypeStruct((B, S, W, D), in_dtype),
        compiler_params=pltpu.CompilerParams(
            dimension_semantics=("parallel", "parallel"),
            vmem_limit_bytes=vmem_limit,
        ),
        cost_estimate=cost,
        interpret=interpret,
    )(q, k, v)

    # torch: return A.squeeze()  (drops ALL size-1 dims, matching .squeeze()).
    return jnp.squeeze(out)


# --------------------------- pure-JAX reference ----------------------------

def reference_forward(q, k, v):
    d_model = q.shape[-1]
    qf = q.astype(jnp.float32)
    kf = k.astype(jnp.float32)
    vf = v.astype(jnp.float32)
    s = jnp.einsum("bsid,bsjd->bsij", qf, kf) / math.sqrt(d_model)
    p = jax.nn.softmax(s, axis=1)                  # Softmax(dim=1)
    a = jnp.einsum("bsij,bsjd->bsid", p, vf)
    return jnp.squeeze(a)


# ----------------------------------- main -----------------------------------

if __name__ == "__main__":
    # (batch, sequence, window, d_model); d_model = 128 keeps the lane axis dense.
    B, S, W, D = 2, 8, 16, 128

    key = jax.random.PRNGKey(0)
    kq, kk, kv, kq2, kk2, kv2 = jax.random.split(key, 6)

    # bf16 inputs -> both einsums take the bf16 MXU path.
    q = jax.random.normal(kq, (B, S, W, D), jnp.float32).astype(jnp.bfloat16)
    k = jax.random.normal(kk, (B, S, W, D), jnp.float32).astype(jnp.bfloat16)
    v = jax.random.normal(kv, (B, S, W, D), jnp.float32).astype(jnp.bfloat16)

    y = jax.block_until_ready(batched_local_attention_pallas(q, k, v))
    y_ref = reference_forward(q, k, v)
    assert y.shape == y_ref.shape, (y.shape, y_ref.shape)
    np.testing.assert_allclose(np.asarray(y, np.float32), np.asarray(y_ref),
                               rtol=2e-2, atol=2e-2)

    # Also exercise the batch-folded path (batch_tile > 1).
    B2 = 4
    q2 = jax.random.normal(kq2, (B2, S, W, D), jnp.float32).astype(jnp.bfloat16)
    k2 = jax.random.normal(kk2, (B2, S, W, D), jnp.float32).astype(jnp.bfloat16)
    v2 = jax.random.normal(kv2, (B2, S, W, D), jnp.float32).astype(jnp.bfloat16)
    y2 = jax.block_until_ready(batched_local_attention_pallas(q2, k2, v2))
    y2_ref = reference_forward(q2, k2, v2)
    assert y2.shape == y2_ref.shape, (y2.shape, y2_ref.shape)
    np.testing.assert_allclose(np.asarray(y2, np.float32), np.asarray(y2_ref),
                               rtol=2e-2, atol=2e-2)

    print("KERNEL_OK")
</pallas_src>

<mosaic_0001>
module attributes {stable_mosaic.version = 11 : i64} {
  func.func @_batched_local_attn_kernel(%arg0: i32, %arg1: i32, %arg2: memref<1x8x16x128xbf16, #tpu.memory_space<vmem>>, %arg3: memref<1x8x16x128xbf16, #tpu.memory_space<vmem>>, %arg4: memref<1x8x16x128xbf16, #tpu.memory_space<vmem>>, %arg5: memref<1x8x16x128xbf16, #tpu.memory_space<vmem>>) attributes {dimension_semantics = [#tpu.dimension_semantics<parallel>, #tpu.dimension_semantics<parallel>], iteration_bounds = array<i64: 2, 1>, scalar_prefetch = 0 : i64, scratch_operands = 0 : i64, tpu.core_type = #tpu.core_type<tc>, window_params = [{transform_indices = @transform_0, window_bounds = array<i64: 1, 8, 16, 128>}, {transform_indices = @transform_1, window_bounds = array<i64: 1, 8, 16, 128>}, {transform_indices = @transform_2, window_bounds = array<i64: 1, 8, 16, 128>}, {transform_indices = @transform_3, window_bounds = array<i64: 1, 8, 16, 128>}]} {
    %c0 = arith.constant 0 : index
    %c0_0 = arith.constant 0 : index
    %c0_1 = arith.constant 0 : index
    %c0_2 = arith.constant 0 : index
    %0 = vector.load %arg2[%c0, %c0_0, %c0_1, %c0_2] : memref<1x8x16x128xbf16, #tpu.memory_space<vmem>>, vector<1x8x16x128xbf16>
    %1 = vector.shape_cast %0 : vector<1x8x16x128xbf16> to vector<8x16x128xbf16>
    %c0_3 = arith.constant 0 : index
    %c0_4 = arith.constant 0 : index
    %c0_5 = arith.constant 0 : index
    %c0_6 = arith.constant 0 : index
    %2 = vector.load %arg3[%c0_3, %c0_4, %c0_5, %c0_6] : memref<1x8x16x128xbf16, #tpu.memory_space<vmem>>, vector<1x8x16x128xbf16>
    %3 = vector.shape_cast %2 : vector<1x8x16x128xbf16> to vector<8x16x128xbf16>
    %c0_7 = arith.constant 0 : index
    %c0_8 = arith.constant 0 : index
    %c0_9 = arith.constant 0 : index
    %c0_10 = arith.constant 0 : index
    %4 = vector.load %arg4[%c0_7, %c0_8, %c0_9, %c0_10] : memref<1x8x16x128xbf16, #tpu.memory_space<vmem>>, vector<1x8x16x128xbf16>
    %5 = vector.shape_cast %4 : vector<1x8x16x128xbf16> to vector<8x16x128xbf16>
    "tpu.trace_start"() <{level = 10 : i32, message = "sid,sjd->sij"}> : () -> ()
    %cst = arith.constant dense<0.000000e+00> : vector<8x16x16xf32>
    %6 = tpu.matmul %1, %3, %cst {dimension_numbers = #tpu.dot_dimension_numbers<[2], [2], [1], [1], [0, 0, 0, 1, 1, 1], [0], [0]>} : vector<8x16x128xbf16>, vector<8x16x128xbf16>, vector<8x16x16xf32> -> vector<8x16x16xf32>
    "tpu.trace_stop"() : () -> ()
    %cst_11 = arith.constant 0.0883883461 : f32
    %7 = vector.broadcast %cst_11 : f32 to vector<8x16x16xf32>
    %8 = arith.mulf %6, %7 : vector<8x16x16xf32>
    %9 = vector.shape_cast %8 : vector<8x16x16xf32> to vector<1x8x16x16xf32>
    %cst_12 = arith.constant dense<0xFF800000> : vector<1x16x16xf32>
    %10 = vector.multi_reduction <maximumf>, %9, %cst_12 [1] : vector<1x8x16x16xf32> to vector<1x16x16xf32>
    %11 = vector.shape_cast %10 : vector<1x16x16xf32> to vector<1x1x16x16xf32>
    %12 = vector.broadcast %11 : vector<1x1x16x16xf32> to vector<1x8x16x16xf32>
    %13 = arith.subf %9, %12 : vector<1x8x16x16xf32>
    %14 = math.exp %13 : vector<1x8x16x16xf32>
    %cst_13 = arith.constant dense<0.000000e+00> : vector<1x16x16xf32>
    %15 = vector.multi_reduction <add>, %14, %cst_13 [1] : vector<1x8x16x16xf32> to vector<1x16x16xf32>
    %16 = vector.shape_cast %15 : vector<1x16x16xf32> to vector<1x1x16x16xf32>
    %17 = tpu.reciprocal %16 {approx = true} : vector<1x1x16x16xf32> -> vector<1x1x16x16xf32>
    %18 = vector.broadcast %17 : vector<1x1x16x16xf32> to vector<1x8x16x16xf32>
    %19 = arith.mulf %14, %18 : vector<1x8x16x16xf32>
    %20 = vector.shape_cast %19 : vector<1x8x16x16xf32> to vector<8x16x16xf32>
    %21 = arith.truncf %20 : vector<8x16x16xf32> to vector<8x16x16xbf16>
    "tpu.trace_start"() <{level = 10 : i32, message = "sij,sjd->sid"}> : () -> ()
    %cst_14 = arith.constant dense<0.000000e+00> : vector<8x16x128xf32>
    %22 = tpu.matmul %21, %5, %cst_14 {dimension_numbers = #tpu.dot_dimension_numbers<[2], [1], [1], [2], [0, 0, 0, 1, 1, 2], [0], [0]>} : vector<8x16x16xbf16>, vector<8x16x128xbf16>, vector<8x16x128xf32> -> vector<8x16x128xf32>
    "tpu.trace_stop"() : () -> ()
    %23 = vector.shape_cast %22 : vector<8x16x128xf32> to vector<1x8x16x128xf32>
    %24 = arith.truncf %23 : vector<1x8x16x128xf32> to vector<1x8x16x128xbf16>
    %c0_15 = arith.constant 0 : index
    %c0_16 = arith.constant 0 : index
    %c0_17 = arith.constant 0 : index
    %c0_18 = arith.constant 0 : index
    %25 = vector.load %arg5[%c0_15, %c0_16, %c0_17, %c0_18] : memref<1x8x16x128xbf16, #tpu.memory_space<vmem>>, vector<1x8x16x128xbf16>
    tpu.vector_store %arg5[%c0_15, %c0_16, %c0_17, %c0_18], %24 {strides = array<i32>} : memref<1x8x16x128xbf16, #tpu.memory_space<vmem>>, vector<1x8x16x128xbf16>,
    return
  }
  func.func @transform_0(%arg0: i32, %arg1: i32) -> (i32, i32, i32, i32) {
    %c0_i32 = arith.constant 0 : i32
    %c0_i32_0 = arith.constant 0 : i32
    %c0_i32_1 = arith.constant 0 : i32
    return %arg0, %c0_i32, %arg1, %c0_i32_0 : i32, i32, i32, i32
  }
  func.func @transform_1(%arg0: i32, %arg1: i32) -> (i32, i32, i32, i32) {
    %c0_i32 = arith.constant 0 : i32
    %c0_i32_0 = arith.constant 0 : i32
    %c0_i32_1 = arith.constant 0 : i32
    %c0_i32_2 = arith.constant 0 : i32
    return %arg0, %c0_i32, %c0_i32_0, %c0_i32_1 : i32, i32, i32, i32
  }
  func.func @transform_2(%arg0: i32, %arg1: i32) -> (i32, i32, i32, i32) {
    %c0_i32 = arith.constant 0 : i32
    %c0_i32_0 = arith.constant 0 : i32
    %c0_i32_1 = arith.constant 0 : i32
    %c0_i32_2 = arith.constant 0 : i32
    return %arg0, %c0_i32, %c0_i32_0, %c0_i32_1 : i32, i32, i32, i32
  }
  func.func @transform_3(%arg0: i32, %arg1: i32) -> (i32, i32, i32, i32) {
    %c0_i32 = arith.constant 0 : i32
    %c0_i32_0 = arith.constant 0 : i32
    %c0_i32_1 = arith.constant 0 : i32
    return %arg0, %c0_i32, %arg1, %c0_i32_0 : i32, i32, i32, i32
  }
}

</mosaic_0001>

<bundles_post_ra>
// kernel: tpu_custom_call.1
= control target key start
LH: loop header
LB: loop body
LE: loop exit
PB: predicated region body
PF: predicated region fallthrough
CT: control target
= control target key end

     0   :  { %s2558_s0 = inlined_call_operand.hbm [shape: bf16[2,8,16,128], index: 0, kind: input, shape index: {}]   ;;  %s2559_s1 = inlined_call_operand.hbm [shape: bf16[2,8,16,128], index: 1, kind: input, shape index: {}]   ;;  %s2560_s2 = inlined_call_operand.hbm [shape: bf16[2,8,16,128], index: 2, kind: input, shape index: {}]   ;;  %s2561_s3 = inlined_call_operand.hbm [shape: bf16[2,8,16,128], index: 3, kind: output, shape index: {}]  }
   0x1   :  { %2567 = sst [smem:[#allocation15_spill]] %s2559_s1 }
   0x2   :  { %8 = vsyncpa [#allocation3], 0 }
   0x3   :  { %10 = vsyncpa [#allocation3 + $0x1], 0 }
   0x4   :  { %11 = vsyncpa [#allocation6], 0 }
   0x5   :  { %13 = vsyncpa [#allocation6 + $0x1], 0 }
   0x6   :  { %14 = vsyncpa [#allocation4], 0 }
   0x7   :  { %16 = vsyncpa [#allocation4 + $0x1], 0  ;;  %s2140_s12 = smov 0   ;;  %s2142_s13 = smov 0  }
   0x8   :  { %s2144_s14 = smov 0   ;;  %s2146_s15 = smov 0  }
   0x9   :  { %s2148_s16 = smov 0   ;;  %s2150_s17 = smov 0  }
   0xa LB: > { %2568 = sst [smem:[#allocation12_spill]] %s2104_s16  ;;  %s2171_s18 = sadd.s32 4294967295, %s2108_s17   ;;  %s2108_s17 = sphi %s2150_s17, %s22_s17   ;;  %s2104_s16 = sphi %s2148_s16, %s2583_s16   ;;  %s2100_s15 = sphi %s2146_s15, %s2582_s15   ;;  %s2096_s14 = sphi %s2144_s14, %s2586_s14   ;;  %s2092_s13 = sphi %s2142_s13, %s2585_s13   ;;  %s2088_s12 = sphi %s2140_s12, %s2584_s12  }
   0xb   : > { %s1537_s19 = sadd.s32 4294967294, %s2108_s17   ;;  %s34_s20 = sadd.s32 1, %s2104_s16 }
   0xc   : > { %s43_s21 = sadd.s32 1, %s2096_s14  ;;  %p36_p0 = scmp.ge.s32.totalorder %s34_s20, 2 }
   0xd   : > { %p50_p1 = scmp.ne.s32.totalorder %s2096_s14, %s2092_s13  ;;  %p51_p2 = scmp.eq.s32.totalorder %s2108_s17, 0 }
   0xe   : > { %p56_p3 = scmp.ne.s32.totalorder %s2092_s13, %s2088_s12  ;;  %s2588_s20 = smov (%p36_p0, %s34_s20), 0 }
   0xf   : > { %2569 = sst [smem:[#allocation13_spill]] %s2588_s20  ;;  %p2183_p4 = por %p51_p2, %p50_p1 }
  0x10   : > { %p57_p5 = scmp.eq.s32.totalorder %s2171_s18, 0  ;;  %s38_s23 = ssub.s32 %s2104_s16, %s2588_s20 }
  0x11   : > { %p134_p6 = scmp.eq.s32.totalorder %s2171_s18, 1  ;;  %p41_p7 = scmp.eq.s32.totalorder %s38_s23, 0 }
  0x12   : > { %p2191_p8 = por %p57_p5, %p56_p3  ;;  %p140_p10 = scmp.eq.s32.totalorder %s1537_s19, 1 }
  0x13   : > { %p2195_p9 = por %p134_p6, %p50_p1  ;;  %p1824_p13 = scmp.lt.s32.totalorder %s2108_s17, 2 }
  0x14   : > { %s2200_s26 = scalar_select %p41_p7, %s2096_s14, %s43_s21  }
  0x15   : > { %p2202_p11 = por %p140_p10, %p56_p3  ;;  %s2562_s28 = sand.u32 1, %s2096_s14  }
  0x16   : > { %2573 = sst [smem:[#allocation14_spill]] %s2200_s26  ;;  %s2211_s29 = sshll.u32 %s2562_s28, 6 }
  0x17   : > { %s2214_s30 = sshll.u32 %s2104_s16, 10  ;;  %p2218_p0 = pnand %p1824_p13, %p2183_p4 }
  0x18   : > { %s183_s5 = sand.u32 1, %s2108_s17   ;;  %s2576_s1 = sld [smem:[#allocation15_spill]] }
  0x19   : > { %s187_s9 = scalar_lea.vmem [#allocation5], %s2211_s29  ;;  %p1549_p1 = scmp.ge.s32.totalorder %s2108_s17, 1 }
  0x1a   : > { %s194_s10 = sshll.u32 %s187_s9, 4  ;;  %p223_p2 = scmp.lt.s32.totalorder %s2108_s17, 3  ;;  %s195_s10 = int_to_ptr.vmem [resolvable:$true] %s194_s10 }
  0x1b   : > { %s2230_s11 = scalar_lea.sflag [#allocation6], %s183_s5  ;;  %p1942_p3 = pneg %p2218_p0 }
  0x1c   : > { %s1953_s19 = scalar_lea.vmem %s195_s10, 1024  ;;  %s2110_s21 = smov [#allocation5]  }
  0x1d   : > { %p1954_p4 = scmp.ne.s32.totalorder %s195_s10, %s1953_s19  ;;  %s1958_s22 = sshll.u32 %s2110_s21, 4  ;;  %s1959_s22 = int_to_ptr.vmem [resolvable:$false] %s1958_s22 }
  0x1e   : > { %s193_s8 = scalar_lea.hbm %s2576_s1, %s2214_s30  ;;  %s1960_s23 = scalar_lea.vmem %s1959_s22, 2048 }
  0x1f   : > { %p1956_p5 = pnand %p1954_p4, %p1942_p3  ;;  %p1961_p7 = scmp.lt.s32.totalorder %s195_s10, %s1959_s22 }
  0x20   : > { %p1962_p10 = scmp.lt.s32.totalorder %s1960_s23, %s1953_s19 }
  0x21   : > { %p1957_p6 = pneg %p1956_p5 }
  0x22   : > { %p1963_p13 = por %p1962_p10, %p1961_p7 }
  0x24   : > { %p1964_p12 = pnand %p1963_p13, %p1957_p6 }
  0x26   : > { %1967 = shalt.err (!%p1964_p12)
}
  0x27   : > { %s2565_s6 = smov 64   ;;  %s2112_s5 = smov 4  }
  0x28   : > { %1816 = dma.hbm_to_vmem [thread:$0]  (!%p2218_p0), %s193_s8, 1024, %s195_s10, %s2230_s11, %s2565_s6, %s2565_s6, %s2112_s5  }
  0x29   : > { %p2247_p4 = pnand %p1549_p1, %p223_p2  ;;  %s172_s21 = scalar_lea.hbm %s2558_s0, %s2214_s30 }
  0x2a   : > { %s164_s22 = scalar_lea.vmem [#allocation2], %s2211_s29  ;;  %s214_s20 = scalar_lea.hbm %s2560_s2, %s2214_s30 }
  0x2b   : > { %s173_s23 = sshll.u32 %s164_s22, 4  ;;  %s2578_s16 = sand.u32 1, %s2096_s14   ;;  %s174_s23 = int_to_ptr.vmem [resolvable:$true] %s173_s23 }
  0x2c   : > { %s161_s26 = scalar_lea.sflag [#allocation3], %s2578_s16  ;;  %s1981_s8 = scalar_lea.vmem %s174_s23, 1024 }
  0x2d   : > { %p1982_p12 = scmp.ne.s32.totalorder %s174_s23, %s1981_s8  ;;  %s2113_s10 = smov [#allocation2]  }
  0x2e   : > { %s1986_s6 = sshll.u32 %s2113_s10, 4  ;;  %s1987_s6 = int_to_ptr.vmem [resolvable:$false] %s1986_s6 }
  0x2f   : > { %p1984_p1 = pnand %p1982_p12, %p1942_p3  ;;  %s1988_s9 = scalar_lea.vmem %s1987_s6, 2048 }
  0x30   : > { %p1989_p5 = scmp.lt.s32.totalorder %s174_s23, %s1987_s6  ;;  %p1990_p6 = scmp.lt.s32.totalorder %s1988_s9, %s1981_s8 }
  0x31   : > { %p1985_p2 = pneg %p1984_p1 }
  0x32   : > { %p1991_p7 = por %p1990_p6, %p1989_p5 }
  0x34   : > { %p1992_p10 = pnand %p1991_p7, %p1985_p2 }
  0x36   : > { %1995 = shalt.err (!%p1992_p10)
}
  0x37   : > { %s2579_s1 = smov 64   ;;  %s208_s16 = scalar_lea.vmem [#allocation7], %s2211_s29 }
  0x38   : > { %1813 = dma.hbm_to_vmem [thread:$0]  (!%p2218_p0), %s172_s21, 1024, %s174_s23, %s161_s26, %s2579_s1, %s2579_s1, %s2112_s5  }
  0x39   : > { %s215_s28 = sshll.u32 %s208_s16, 4  ;;  %s2114_s6 = smov [#allocation7]   ;;  %s216_s28 = int_to_ptr.vmem [resolvable:$true] %s215_s28 }
  0x3a   : > { %s2009_s19 = scalar_lea.vmem %s216_s28, 1024  ;;  %s2014_s22 = sshll.u32 %s2114_s6, 4  ;;  %s2015_s22 = int_to_ptr.vmem [resolvable:$false] %s2014_s22 }
  0x3b   : > { %p2010_p13 = scmp.ne.s32.totalorder %s216_s28, %s2009_s19  ;;  %s2016_s8 = scalar_lea.vmem %s2015_s22, 2048 }
  0x3c   : > { %p2017_p2 = scmp.lt.s32.totalorder %s216_s28, %s2015_s22  ;;  %p2018_p5 = scmp.lt.s32.totalorder %s2016_s8, %s2009_s19 }
  0x3d   : > { %p2012_p12 = pnand %p2010_p13, %p1942_p3 }
  0x3e   : > { %p2019_p6 = por %p2018_p5, %p2017_p2 }
  0x3f   : > { %p2013_p1 = pneg %p2012_p12 }
  0x41   : > { %p2020_p7 = pnand %p2019_p6, %p2013_p1 }
  0x43   : > { %2023 = shalt.err (!%p2020_p7)
}
  0x44   : > { %1819 = dma.hbm_to_vmem [thread:$0]  (!%p2218_p0), %s214_s20, 1024, %s216_s28, %s2230_s11, %s2579_s1, %s2579_s1, %s2112_s5  }
  0x45   : > { %227 = sbr.rel (%p2247_p4) target bundleno = 608 (0x260), region = 32  ;;  %s2288_s21 = sand.u32 (!%p2247_p4), 1, %s2092_s13  }
  0x46   : > { %s2291_s4 = sshll.u32 (!%p2247_p4), %s2288_s21, 6  ;;  %s230_s23 = scalar_lea.sflag (!%p2247_p4), [#allocation3], %s2288_s21 }
  0x47   : > { %s2295_s10 = scalar_lea.vmem (!%p2247_p4), [#allocation2], %s2291_s4 }
  0x4a   : > { %2075 = dma.done.wait (%p2191_p8), %s230_s23, 1024  }
  0x4b   : > { %2077 = vsyncadd (%p2191_p8), %s230_s23, 4294966272  ;;  %s238_s20 = sand.u32 1, %s2171_s18   ;;  %s2303_s11 = scalar_lea.vmem [#allocation5], %s2291_s4 }
  0x4c   : > { %s239_s30 = scalar_lea.sflag [#allocation6], %s238_s20 }
  0x4d   : > { %2079 = dma.done.wait (%p2191_p8), %s239_s30, 2048  }
  0x4e   : > { %2081 = vsyncadd (%p2191_p8), %s239_s30, 4294965248  ;;  %v2115_v0 = vmov 0.0   ;;  %vm2116_vm0 = vmmov 0   ;;  %v1880_v1 = vld [vmem:[%s2303_s11] sm:$0xff]   ;;  %v1881_v2 = vld [vmem:[%s2303_s11 + $0x8] sm:$0xff]   ;;  %s2356_s18 = scalar_lea.vmem [#allocation7], %s2291_s4 }
  0x4f   : > { %1706 = vmatprep.subr.bf16.mxu0 %v2115_v0  ;;  %1712 = vmatprep.subr.bf16.mxu1 %v2115_v0  ;;  %v1882_v3 = vld [vmem:[%s2295_s10] sm:$0xff]   ;;  %v1883_v4 = vld [vmem:[%s2295_s10 + $0x8] sm:$0xff]   ;;  %v1884_v5 = vld [vmem:[%s2303_s11 + $0x10] sm:$0xff]   ;;  %vm775_vm1 = vcmask 130048   ;;  %s2493_s24 = scalar_lea.vmem [#allocation8], %s2291_s4  ;;  %s1626_s7 = sshll.u32 %s2100_s15, 10 }
  0x50   : > { %1708 = vmatprep.mubr.msk.bf16.mxu0 %vm2116_vm0, %v2115_v0  ;;  %1714 = vmatprep.mubr.msk.bf16.mxu1 %vm2116_vm0, %v2115_v0  ;;  %v1885_v6 = vld [vmem:[%s2303_s11 + $0x18] sm:$0xff]   ;;  %v1886_v7 = vld [vmem:[%s2295_s10 + $0x10] sm:$0xff]   ;;  %v1888_v9 = vld [vmem:[%s2303_s11 + $0x20] sm:$0xff]   ;;  %s1406_s5 = sshll.u32 %s2493_s24, 4  ;;  %s2508_s16 = scalar_lea.hbm %s2561_s3, %s1626_s7  ;;  %s2503_s5 = int_to_ptr.vmem [resolvable:$true] %s1406_s5 }
  0x51   : > { %1707 = vmatpush3.bf16.xpose.msra.mxu0 %v1880_v1  ;;  %1713 = vmatpush3.bf16.xpose.msra.mxu1 %v1881_v2  ;;  %v1887_v8 = vld [vmem:[%s2295_s10 + $0x18] sm:$0xff]   ;;  %v1889_v10 = vld [vmem:[%s2303_s11 + $0x28] sm:$0xff]   ;;  %v1890_v11 = vld [vmem:[%s2295_s10 + $0x20] sm:$0xff]   ;;  %s1391_s15 = scalar_lea.sflag [#allocation4], %s2288_s21  ;;  %s2024_s28 = scalar_lea.vmem %s2503_s5, 1024 }
  0x52   : > { %1718 = vmatprep.subr.bf16.mxu0 %v2115_v0  ;;  %1724 = vmatprep.subr.bf16.mxu1 %v2115_v0  ;;  %v1891_v12 = vld [vmem:[%s2295_s10 + $0x28] sm:$0xff]   ;;  %v1892_v13 = vld [vmem:[%s2303_s11 + $0x30] sm:$0xff]   ;;  %v1893_v14 = vld [vmem:[%s2303_s11 + $0x38] sm:$0xff]   ;;  %p2025_p8 = scmp.ne.s32.totalorder %s2503_s5, %s2024_s28  ;;  %s2117_s19 = smov [#allocation8]  }
  0x53   : > { %v1894_v15 = vld [vmem:[%s2295_s10 + $0x30] sm:$0xff]   ;;  %v1895_v16 = vld [vmem:[%s2295_s10 + $0x38] sm:$0xff]   ;;  %v1896_v17 = vld [vmem:[%s2356_s18] sm:$0xff]   ;;  %s2028_s6 = sshll.u32 %s2117_s19, 4  ;;  %s2029_s6 = int_to_ptr.vmem [resolvable:$false] %s2028_s6 }
  0x54   : > { %v1897_v18 = vld [vmem:[%s2356_s18 + $0x8] sm:$0xff]   ;;  %p2026_p0 = pnand %p2025_p8, %p2195_p9  ;;  %s2030_s22 = scalar_lea.vmem %s2029_s6, 2048 }
  0x55   : > { %p2031_p4 = scmp.lt.s32.totalorder %s2503_s5, %s2029_s6  ;;  %p2032_p10 = scmp.lt.s32.totalorder %s2030_s22, %s2024_s28 }
  0x56   : > { %p2027_p3 = pneg %p2026_p0 }
  0x57   : > { %p2033_p13 = por %p2032_p10, %p2031_p4 }
  0x58   : > { %1709 = vmatmul.mubr.bf16.vlgmr.msra.gmra.mxu0 %v1882_v3  ;;  %1715 = vmatmul.mubr.bf16.vlgmr.msra.gmra.mxu1 %v1883_v4 }
  0x59   : > { %1719 = vmatpush3.bf16.xpose.msra.mxu0 %v1884_v5  ;;  %1725 = vmatpush3.bf16.xpose.msra.mxu1 %v1885_v6  ;;  %p2034_p12 = pnand %p2033_p13, %p2027_p3 }
  0x5a   : > { %1720 = vmatprep.mubr.msk.bf16.mxu0 %vm2116_vm0, %v2115_v0  ;;  %1726 = vmatprep.mubr.msk.bf16.mxu1 %vm2116_vm0, %v2115_v0 }
  0x5b   : > { %1730 = vmatprep.subr.bf16.mxu0 %v2115_v0  ;;  %1736 = vmatprep.subr.bf16.mxu1 %v2115_v0 }
  0x60   : > { %1721 = vmatmul.mubr.bf16.vlgmr.msra.gmra.mxu0 %v1886_v7  ;;  %1727 = vmatmul.mubr.bf16.vlgmr.msra.gmra.mxu1 %v1887_v8 }
  0x61   : > { %1731 = vmatpush3.bf16.xpose.msra.mxu0 %v1888_v9  ;;  %1737 = vmatpush3.bf16.xpose.msra.mxu1 %v1889_v10 }
  0x62   : > { %1732 = vmatprep.mubr.msk.bf16.mxu0 %vm2116_vm0, %v2115_v0  ;;  %1738 = vmatprep.mubr.msk.bf16.mxu1 %vm2116_vm0, %v2115_v0 }
  0x63   : > { %1742 = vmatprep.subr.bf16.mxu0 %v2115_v0  ;;  %1748 = vmatprep.subr.bf16.mxu1 %v2115_v0 }
  0x68   : > { %1733 = vmatmul.mubr.bf16.vlgmr.msra.gmra.mxu0 %v1890_v11  ;;  %1739 = vmatmul.mubr.bf16.vlgmr.msra.gmra.mxu1 %v1891_v12 }
  0x69   : > { %1743 = vmatpush3.bf16.xpose.msra.mxu0 %v1892_v13  ;;  %1749 = vmatpush3.bf16.xpose.msra.mxu1 %v1893_v14 }
  0x6a   : > { %1744 = vmatprep.mubr.msk.bf16.mxu0 %vm2116_vm0, %v2115_v0  ;;  %1750 = vmatprep.mubr.msk.bf16.mxu1 %vm2116_vm0, %v2115_v0 }
  0x6b   : > { %1754 = vmatprep.subr.bf16.mxu0 %v2115_v0  ;;  %1760 = vmatprep.subr.bf16.mxu1 %v2115_v0 }
  0x70   : > { %1745 = vmatmul.mubr.bf16.vlgmr.msra.gmra.mxu0 %v1894_v15  ;;  %1751 = vmatmul.mubr.bf16.vlgmr.msra.gmra.mxu1 %v1895_v16 }
  0x71   : > { %1756 = vmatprep.mubr.msk.bf16.mxu0 %vm2116_vm0, %v2115_v0  ;;  %1762 = vmatprep.mubr.msk.bf16.mxu1 %vm2116_vm0, %v2115_v0 }
  0x72   : > { %1755 = vmatpush3.bf16.msra.mxu0 %v1896_v17  ;;  %1761 = vmatpush3.bf16.msra.mxu1 %v1897_v18 }
  0x73   : > { %1766 = vmatprep.subr.bf16.mxu0 %v2115_v0  ;;  %1772 = vmatprep.subr.bf16.mxu1 %v2115_v0 }
 0x118   : > { %v381_v19 = vpop.f32.mrf.mxu0  ;;  %v434_v20 = vpop.f32.mrf.mxu1 }
 0x119   : > { %v759_v40 = vmul.f32 0.088388346, %v381_v19  ;;  %v761_v43 = vmul.f32 0.088388346, %v434_v20 }
 0x11a   : > { %v1710_v21 = vpop.f32.mrf.mxu0  ;;  %v1716_v22 = vpop.f32.mrf.mxu1 }
 0x11b   : > { %v776_v52 = vsel %vm775_vm1, %v759_v40, -inf  ;;  %v777_v57 = vsel %vm775_vm1, %v761_v43, -inf }
 0x11c   : > { %v384_v23 = vpop.f32.mrf.mxu0  ;;  %v437_v24 = vpop.f32.mrf.mxu1 }
 0x11d   : > { %v2374_v49 = vmul.f32 0.088388346, %v384_v23  ;;  %v2386_v58 = vmul.f32 0.088388346, %v437_v24 }
 0x11e   : > { %v1711_v25 = vpop.f32.mrf.mxu0  ;;  %v1717_v26 = vpop.f32.mrf.mxu1 }
 0x11f   : > { %v791_v4 = vsel %vm775_vm1, %v2374_v49, -inf  ;;  %v792_v17 = vsel %vm775_vm1, %v2386_v58, -inf }
 0x120   : > { %v487_v27 = vpop.f32.mrf.mxu0  ;;  %v540_v28 = vpop.f32.mrf.mxu1 }
 0x121   : > { %v2362_v36 = vmul.f32 0.088388346, %v487_v27  ;;  %v2364_v38 = vmul.f32 0.088388346, %v540_v28 }
 0x122   : > { %v1722_v29 = vpop.f32.mrf.mxu0  ;;  %v1728_v30 = vpop.f32.mrf.mxu1 }
 0x123   : > { %v778_v46 = vsel %vm775_vm1, %v2362_v36, -inf  ;;  %v780_v50 = vsel %vm775_vm1, %v2364_v38, -inf }
 0x124   : > { %v490_v31 = vpop.f32.mrf.mxu0  ;;  %v543_v32 = vpop.f32.mrf.mxu1  ;;  %v779_v59 = vmax.f32 %v776_v52, %v778_v46  ;;  %v781_v62 = vmax.f32 %v777_v57, %v780_v50 }
 0x125   : > { %v2372_v47 = vmul.f32 0.088388346, %v490_v31  ;;  %v2379_v53 = vmul.f32 0.088388346, %v543_v32 }
 0x126   : > { %v1723_v33 = vpop.f32.mrf.mxu0  ;;  %v1729_v34 = vpop.f32.mrf.mxu1 }
 0x127   : > { %v793_v63 = vsel %vm775_vm1, %v2372_v47, -inf  ;;  %v795_v8 = vsel %vm775_vm1, %v2379_v53, -inf }
 0x128   : > { %v593_v35 = vpop.f32.mrf.mxu0  ;;  %v646_v37 = vpop.f32.mrf.mxu1  ;;  %v794_v13 = vmax.f32 %v791_v4, %v793_v63  ;;  %v796_v22 = vmax.f32 %v792_v17, %v795_v8 }
 0x129   : > { %v2366_v41 = vmul.f32 0.088388346, %v593_v35  ;;  %v2368_v44 = vmul.f32 0.088388346, %v646_v37 }
 0x12a   : > { %v1734_v39 = vpop.f32.mrf.mxu0  ;;  %v1740_v42 = vpop.f32.mrf.mxu1 }
 0x12b   : > { %v782_v54 = vsel %vm775_vm1, %v2366_v41, -inf  ;;  %v784_v60 = vsel %vm775_vm1, %v2368_v44, -inf }
 0x12c   : > { %v596_v45 = vpop.f32.mrf.mxu0  ;;  %v649_v48 = vpop.f32.mrf.mxu1  ;;  %v783_v5 = vmax.f32 %v779_v59, %v782_v54  ;;  %v785_v9 = vmax.f32 %v781_v62, %v784_v60 }
 0x12d   : > { %v2383_v55 = vmul.f32 0.088388346, %v596_v45  ;;  %v2392_v1 = vmul.f32 0.088388346, %v649_v48 }
 0x12e   : > { %v1735_v51 = vpop.f32.mrf.mxu0  ;;  %v1741_v56 = vpop.f32.mrf.mxu1 }
 0x12f   : > { %v797_v10 = vsel %vm775_vm1, %v2383_v55, -inf  ;;  %v799_v18 = vsel %vm775_vm1, %v2392_v1, -inf }
 0x130   : > { %v699_v61 = vpop.f32.mrf.mxu0  ;;  %v752_v3 = vpop.f32.mrf.mxu1  ;;  %v798_v23 = vmax.f32 %v794_v13, %v797_v10  ;;  %v800_v29 = vmax.f32 %v796_v22, %v799_v18 }
 0x131   : > { %v771_v2 = vmul.f32 0.088388346, %v699_v61  ;;  %v2396_v6 = vmul.f32 0.088388346, %v752_v3 }
 0x132   : > { %v1746_v7 = vpop.f32.mrf.mxu0  ;;  %v1752_v12 = vpop.f32.mrf.mxu1 }
 0x133   : > { %v786_v11 = vsel %vm775_vm1, %v771_v2, -inf  ;;  %v788_v15 = vsel %vm775_vm1, %v2396_v6, -inf }
 0x134   : > { %v787_v14 = vmax.f32 %v783_v5, %v786_v11  ;;  %v702_v16 = vpop.f32.mrf.mxu0  ;;  %v789_v19 = vmax.f32 %v785_v9, %v788_v15  ;;  %v755_v21 = vpop.f32.mrf.mxu1 }
 0x135   : > { %v772_v20 = vmul.f32 0.088388346, %v702_v16  ;;  %v774_v24 = vmul.f32 0.088388346, %v755_v21 }
 0x136   : > { %v1747_v25 = vpop.f32.mrf.mxu0  ;;  %v790_v26 = vmax.f32 %v787_v14, %v789_v19  ;;  %v1753_v28 = vpop.f32.mrf.mxu1 }
 0x137   : > { %v801_v27 = vsel %vm775_vm1, %v772_v20, -inf  ;;  %v803_v31 = vsel %vm775_vm1, %v774_v24, -inf }
 0x138   : > { %v802_v30 = vmax.f32 %v798_v23, %v801_v27  ;;  %v806_v32 = vsub.f32 %v759_v40, %v790_v26  ;;  %v808_v33 = vsub.f32 %v761_v43, %v790_v26  ;;  %v810_v34 = vsub.f32 %v2362_v36, %v790_v26 }
 0x139   : > { %v812_v35 = vsub.f32 %v2364_v38, %v790_v26  ;;  %v814_v37 = vsub.f32 %v2366_v41, %v790_v26  ;;  %v816_v39 = vsub.f32 %v2368_v44, %v790_v26  ;;  %v804_v48 = vmax.f32 %v800_v29, %v803_v31 }
 0x13a   : > { %v822_v42 = vmul.f32 1.442695, %v806_v32  ;;  %v826_v45 = vmul.f32 1.442695, %v808_v33  ;;  %v830_v46 = vmul.f32 1.442695, %v810_v34  ;;  %v818_v50 = vsub.f32 %v771_v2, %v790_v26 }
 0x13b   : > { %v834_v51 = vmul.f32 1.442695, %v812_v35  ;;  %v805_v52 = vmax.f32 %v802_v30, %v804_v48  ;;  %v838_v54 = vmul.f32 1.442695, %v814_v37  ;;  %v842_v40 = vmul.f32 1.442695, %v816_v39 }
 0x13c   : > { %1904 = vpow2.f32 %v822_v42  ;;  %v846_v43 = vmul.f32 1.442695, %v818_v50  ;;  %v820_v60 = vsub.f32 %v2396_v6, %v790_v26 }
 0x13d   : > { %1906 = vpow2.f32 %v826_v45  ;;  %v807_v36 = vsub.f32 %v2374_v49, %v805_v52  ;;  %v809_v38 = vsub.f32 %v2386_v58, %v805_v52  ;;  %v811_v41 = vsub.f32 %v2372_v47, %v805_v52 }
 0x13e   : > { %1908 = vpow2.f32 %v830_v46  ;;  %v813_v44 = vsub.f32 %v2379_v53, %v805_v52  ;;  %v815_v57 = vsub.f32 %v2383_v55, %v805_v52  ;;  %v817_v49 = vsub.f32 %v2392_v1, %v805_v52 }
 0x13f   : > { %1910 = vpow2.f32 %v834_v51  ;;  %v824_v56 = vmul.f32 1.442695, %v807_v36  ;;  %v828_v59 = vmul.f32 1.442695, %v809_v38  ;;  %v832_v61 = vmul.f32 1.442695, %v811_v41 }
 0x140   : > { %1912 = vpow2.f32 %v838_v54  ;;  %v836_v62 = vmul.f32 1.442695, %v813_v44  ;;  %v819_v58 = vsub.f32 %v772_v20, %v805_v52  ;;  %v840_v47 = vmul.f32 1.442695, %v815_v57 }
 0x141   : > { %1914 = vpow2.f32 %v842_v40  ;;  %v850_v63 = vmul.f32 1.442695, %v820_v60  ;;  %v821_v53 = vsub.f32 %v774_v24, %v805_v52  ;;  %v844_v2 = vmul.f32 1.442695, %v817_v49  ;;  %v1898_v60 = vld [vmem:[%s2356_s18 + $0x10] sm:$0xff]  }
 0x142   : > { %1916 = vpow2.f32 %v846_v43  ;;  %v848_v55 = vmul.f32 1.442695, %v819_v58 }
 0x143   : > { %1918 = vpow2.f32 %v824_v56  ;;  %v852_v7 = vmul.f32 1.442695, %v821_v53 }
 0x144   : > { %1920 = vpow2.f32 %v828_v59 }
 0x145   : > { %1922 = vpow2.f32 %v832_v61  ;;  %v1899_v61 = vld [vmem:[%s2356_s18 + $0x18] sm:$0xff]  }
 0x146   : > { %1924 = vpow2.f32 %v836_v62 }
 0x147   : > { %1926 = vpow2.f32 %v840_v47 }
 0x148   : > { %1928 = vpow2.f32 %v850_v63 }
 0x149   : > { %v1905_v3 = vpop.eup %1904  ;;  %1930 = vpow2.f32 %v844_v2  ;;  %v1900_v2 = vld [vmem:[%s2356_s18 + $0x20] sm:$0xff]  }
 0x14a   : > { %v1907_v4 = vpop.eup %1906  ;;  %v854_v5 = vsel %vm775_vm1, %v1905_v3, 0.0  ;;  %1932 = vpow2.f32 %v848_v55 }
 0x14b   : > { %v2423_v6 = vpop.eup %1908  ;;  %v855_v1 = vsel %vm775_vm1, %v1907_v4, 0.0  ;;  %1934 = vpow2.f32 %v852_v7 }
 0x14c   : > { %v2426_v8 = vpop.eup %1910  ;;  %v856_v9 = vadd.f32 %v855_v1, %v854_v5  ;;  %v857_v10 = vsel %vm775_vm1, %v2423_v6, 0.0 }
 0x14d   : > { %v2430_v11 = vpop.eup %1912  ;;  %v859_v14 = vsel %vm775_vm1, %v2426_v8, 0.0 }
 0x14e   : > { %v858_v12 = vadd.f32 %v857_v10, %v856_v9  ;;  %v2432_v13 = vpop.eup %1914  ;;  %v861_v18 = vsel %vm775_vm1, %v2430_v11, 0.0  ;;  %v1903_v9 = vld [vmem:[%s2356_s18 + $0x38] sm:$0xff]  }
 0x14f   : > { %v2436_v15 = vpop.eup %1916  ;;  %v863_v23 = vsel %vm775_vm1, %v2432_v13, 0.0 }
 0x150   : > { %v860_v16 = vadd.f32 %v859_v14, %v858_v12  ;;  %v1919_v17 = vpop.eup %1918  ;;  %v865_v32 = vsel %vm775_vm1, %v2436_v15, 0.0 }
 0x151   : > { %v1921_v19 = vpop.eup %1920  ;;  %v869_v21 = vsel %vm775_vm1, %v1919_v17, 0.0 }
 0x152   : > { %v862_v20 = vadd.f32 %v861_v18, %v860_v16  ;;  %v1923_v22 = vpop.eup %1922  ;;  %v870_v24 = vsel %vm775_vm1, %v1921_v19, 0.0 }
 0x153   : > { %v1925_v25 = vpop.eup %1924  ;;  %v871_v27 = vadd.f32 %v870_v24, %v869_v21  ;;  %v872_v28 = vsel %vm775_vm1, %v1923_v22, 0.0 }
 0x154   : > { %v864_v26 = vadd.f32 %v863_v23, %v862_v20  ;;  %v1927_v29 = vpop.eup %1926  ;;  %v874_v33 = vsel %vm775_vm1, %v1925_v25, 0.0 }
 0x155   : > { %v873_v30 = vadd.f32 %v872_v28, %v871_v27  ;;  %v2445_v31 = vpop.eup %1928  ;;  %v876_v39 = vsel %vm775_vm1, %v1927_v29, 0.0 }
 0x156   : > { %v1931_v34 = vpop.eup %1930  ;;  %v866_v35 = vadd.f32 %v865_v32, %v864_v26  ;;  %v867_v46 = vsel %vm775_vm1, %v2445_v31, 0.0 }
 0x157   : > { %v875_v37 = vadd.f32 %v874_v33, %v873_v30  ;;  %v1933_v42 = vpop.eup %1932  ;;  %v878_v48 = vsel %vm775_vm1, %v1931_v34, 0.0 }
 0x158   : > { %v1935_v50 = vpop.eup %1934  ;;  %v868_v51 = vadd.f32 %v867_v46, %v866_v35  ;;  %v880_v54 = vsel %vm775_vm1, %v1933_v42, 0.0 }
 0x159   : > { %v877_v45 = vadd.f32 %v876_v39, %v875_v37  ;;  %v882_v36 = vsel %vm775_vm1, %v1935_v50, 0.0 }
 0x15a   : > { %1936 = vrcp.f32 %v868_v51 }
 0x15b   : > { %v879_v52 = vadd.f32 %v878_v48, %v877_v45 }
 0x15d   : > { %v881_v40 = vadd.f32 %v880_v54, %v879_v52 }
 0x15f   : > { %v883_v38 = vadd.f32 %v882_v36, %v881_v40 }
 0x161   : > { %1938 = vrcp.f32 %v883_v38 }
 0x167   : > { %v1937_v41 = vpop.eup %1936 }
 0x168   : > { %v886_v44 = vmul.f32 %v1937_v41, %v1905_v3  ;;  %v888_v57 = vmul.f32 %v1937_v41, %v1907_v4  ;;  %v890_v63 = vmul.f32 %v1937_v41, %v2423_v6  ;;  %v892_v53 = vmul.f32 %v1937_v41, %v2426_v8  ;;  %v1901_v3 = vld [vmem:[%s2356_s18 + $0x28] sm:$0xff]   ;;  %v1902_v8 = vld [vmem:[%s2356_s18 + $0x30] sm:$0xff]  }
 0x169   : > { %v894_v1 = vmul.f32 %v1937_v41, %v2430_v11  ;;  %v896_v7 = vmul.f32 %v1937_v41, %v2432_v13  ;;  %v898_v13 = vmul.f32 %v1937_v41, %v2436_v15  ;;  %v900_v16 = vmul.f32 %v1937_v41, %v2445_v31 }
 0x16e   : > { %v1939_v43 = vpop.eup %1938 }
 0x16f   : > { %v887_v56 = vmul.f32 %v1939_v43, %v1919_v17  ;;  %v889_v59 = vmul.f32 %v1939_v43, %v1921_v19  ;;  %v891_v58 = vmul.f32 %v1939_v43, %v1923_v22  ;;  %v893_v47 = vmul.f32 %v1939_v43, %v1925_v25 }
 0x170   : > { %v895_v5 = vmul.f32 %v1939_v43, %v1927_v29  ;;  %v897_v6 = vmul.f32 %v1939_v43, %v1931_v34  ;;  %v899_v14 = vmul.f32 %v1939_v43, %v1933_v42  ;;  %v901_v11 = vmul.f32 %v1939_v43, %v1935_v50 }
 0x171   : > { %v902_v49 = vpack.c.bf16 %v887_v56, %v886_v44  ;;  %v903_v62 = vpack.c.bf16 %v889_v59, %v888_v57  ;;  %v904_v55 = vpack.c.bf16 %v891_v58, %v890_v63  ;;  %v905_v4 = vpack.c.bf16 %v893_v47, %v892_v53 }
 0x172   : > { %v906_v10 = vpack.c.bf16 %v895_v5, %v894_v1  ;;  %v907_v12 = vpack.c.bf16 %v897_v6, %v896_v7  ;;  %v908_v17 = vpack.c.bf16 %v899_v14, %v898_v13  ;;  %v909_v18 = vpack.c.bf16 %v901_v11, %v900_v16 }
 0x173   : > { %1757 = vmatmul.mubr.msk.bf16.vlgmr.msra.gmra.mxu0 %vm775_vm1, %v902_v49  ;;  %1763 = vmatmul.mubr.msk.bf16.vlgmr.msra.gmra.mxu1 %vm775_vm1, %v903_v62 }
 0x174   : > { %1767 = vmatpush3.bf16.msra.mxu0 %v1898_v60  ;;  %1773 = vmatpush3.bf16.msra.mxu1 %v1899_v61 }
 0x175   : > { %1768 = vmatprep.mubr.msk.bf16.mxu0 %vm2116_vm0, %v2115_v0  ;;  %1774 = vmatprep.mubr.msk.bf16.mxu1 %vm2116_vm0, %v2115_v0 }
 0x176   : > { %1778 = vmatprep.subr.bf16.mxu0 %v2115_v0  ;;  %1784 = vmatprep.subr.bf16.mxu1 %v2115_v0 }
 0x17b   : > { %1769 = vmatmul.mubr.msk.bf16.vlgmr.msra.gmra.mxu0 %vm775_vm1, %v904_v55  ;;  %1775 = vmatmul.mubr.msk.bf16.vlgmr.msra.gmra.mxu1 %vm775_vm1, %v905_v4 }
 0x17c   : > { %1779 = vmatpush3.bf16.msra.mxu0 %v1900_v2  ;;  %1785 = vmatpush3.bf16.msra.mxu1 %v1901_v3 }
 0x17d   : > { %1780 = vmatprep.mubr.msk.bf16.mxu0 %vm2116_vm0, %v2115_v0  ;;  %1786 = vmatprep.mubr.msk.bf16.mxu1 %vm2116_vm0, %v2115_v0 }
 0x17e   : > { %1790 = vmatprep.subr.bf16.mxu0 %v2115_v0  ;;  %1796 = vmatprep.subr.bf16.mxu1 %v2115_v0 }
 0x183   : > { %1781 = vmatmul.mubr.msk.bf16.vlgmr.msra.gmra.mxu0 %vm775_vm1, %v906_v10  ;;  %1787 = vmatmul.mubr.msk.bf16.vlgmr.msra.gmra.mxu1 %vm775_vm1, %v907_v12 }
 0x184   : > { %1791 = vmatpush3.bf16.msra.mxu0 %v1902_v8  ;;  %1797 = vmatpush3.bf16.msra.mxu1 %v1903_v9 }
 0x185   : > { %1792 = vmatprep.mubr.msk.bf16.mxu0 %vm2116_vm0, %v2115_v0  ;;  %1798 = vmatprep.mubr.msk.bf16.mxu1 %vm2116_vm0, %v2115_v0 }
 0x18b   : > { %1793 = vmatmul.mubr.msk.bf16.vlgmr.msra.gmra.mxu0 %vm775_vm1, %v908_v17  ;;  %1799 = vmatmul.mubr.msk.bf16.vlgmr.msra.gmra.mxu1 %vm775_vm1, %v909_v18 }
 0x233   : > { %v953_v19 = vpop.f32.mrf.mxu0  ;;  %v1003_v20 = vpop.f32.mrf.mxu1 }
 0x235   : > { %v1758_v21 = vpop.f32.mrf.mxu0  ;;  %v1764_v22 = vpop.f32.mrf.mxu1 }
 0x237   : > { %v956_v23 = vpop.f32.mrf.mxu0  ;;  %v1006_v24 = vpop.f32.mrf.mxu1 }
 0x238   : > { %v1630_v0 = vpack.c.bf16 %v956_v23, %v953_v19  ;;  %v1635_v25 = vpack.c.bf16 %v1006_v24, %v1003_v20 }
 0x239   : > { %v1759_v26 = vpop.f32.mrf.mxu0  ;;  %v1765_v27 = vpop.f32.mrf.mxu1 }
 0x23a   : > { %1631 = vst [vmem:[%s2493_s24] sm:$0xff] %v1630_v0   ;;  %1667 = vst [vmem:[%s2493_s24 + $0x8] sm:$0xff] %v1635_v25  }
 0x23b   : > { %v1053_v15 = vpop.f32.mrf.mxu0  ;;  %v1103_v28 = vpop.f32.mrf.mxu1 }
 0x23d   : > { %v1770_v29 = vpop.f32.mrf.mxu0  ;;  %v1776_v30 = vpop.f32.mrf.mxu1 }
 0x23f   : > { %v1056_v31 = vpop.f32.mrf.mxu0  ;;  %v1106_v32 = vpop.f32.mrf.mxu1 }
 0x240   : > { %v1640_v33 = vpack.c.bf16 %v1056_v31, %v1053_v15  ;;  %v1645_v34 = vpack.c.bf16 %v1106_v32, %v1103_v28 }
 0x241   : > { %v1771_v35 = vpop.f32.mrf.mxu0  ;;  %v1777_v37 = vpop.f32.mrf.mxu1 }
 0x242   : > { %1668 = vst [vmem:[%s2493_s24 + $0x10] sm:$0xff] %v1640_v33   ;;  %1669 = vst [vmem:[%s2493_s24 + $0x18] sm:$0xff] %v1645_v34  }
 0x243   : > { %v1153_v39 = vpop.f32.mrf.mxu0  ;;  %v1203_v42 = vpop.f32.mrf.mxu1 }
 0x245   : > { %v1782_v45 = vpop.f32.mrf.mxu0  ;;  %v1788_v46 = vpop.f32.mrf.mxu1 }
 0x247   : > { %v1156_v48 = vpop.f32.mrf.mxu0  ;;  %v1206_v50 = vpop.f32.mrf.mxu1 }
 0x248   : > { %v1650_v51 = vpack.c.bf16 %v1156_v48, %v1153_v39  ;;  %v1655_v52 = vpack.c.bf16 %v1206_v50, %v1203_v42 }
 0x249   : > { %v1783_v54 = vpop.f32.mrf.mxu0  ;;  %v1789_v40 = vpop.f32.mrf.mxu1 }
 0x24a   : > { %1670 = vst [vmem:[%s2493_s24 + $0x20] sm:$0xff] %v1650_v51   ;;  %1671 = vst [vmem:[%s2493_s24 + $0x28] sm:$0xff] %v1655_v52  }
 0x24b   : > { %v1253_v36 = vpop.f32.mrf.mxu0  ;;  %v1303_v38 = vpop.f32.mrf.mxu1 }
 0x24d   : > { %v1794_v41 = vpop.f32.mrf.mxu0  ;;  %v1800_v43 = vpop.f32.mrf.mxu1 }
 0x24f   : > { %v1256_v44 = vpop.f32.mrf.mxu0  ;;  %v1306_v56 = vpop.f32.mrf.mxu1 }
 0x250   : > { %v1660_v57 = vpack.c.bf16 %v1256_v44, %v1253_v36  ;;  %v1665_v59 = vpack.c.bf16 %v1306_v56, %v1303_v38 }
 0x251   : > { %v1795_v60 = vpop.f32.mrf.mxu0  ;;  %v1801_v61 = vpop.f32.mrf.mxu1 }
 0x252   : > { %1672 = vst [vmem:[%s2493_s24 + $0x30] sm:$0xff] %v1660_v57   ;;  %1673 = vst [vmem:[%s2493_s24 + $0x38] sm:$0xff] %v1665_v59  }
 0x253   : > { %2037 = shalt.err (!%p2034_p12)
}
 0x254   : > { %s2038_s8 = scalar_lea.hbm %s2508_s16, 1024  ;;  %s2042_s4 = scalar_lea.hbm %s2561_s3, 2048 }
 0x255   : > { %p2039_p1 = scmp.ne.s32.totalorder %s2508_s16, %s2038_s8  ;;  %p2043_p6 = scmp.lt.s32.totalorder %s2508_s16, %s2561_s3 }
 0x256   : > { %p2044_p7 = scmp.lt.s32.totalorder %s2042_s4, %s2038_s8 }
 0x257   : > { %p2040_p2 = pnand %p2039_p1, %p2195_p9 }
 0x258   : > { %p2045_p8 = por %p2044_p7, %p2043_p6 }
 0x259   : > { %p2041_p5 = pneg %p2040_p2 }
 0x25b   : > { %p2046_p0 = pnand %p2045_p8, %p2041_p5 }
 0x25d   : > { %2049 = shalt.err (!%p2046_p0)
}
 0x25e   : > { %s2118_s20 = smov 64   ;;  %s2119_s30 = smov 4  }
 0x25f   : > { %1808 = dma.vmem_to_hbm [thread:$0]  (%p2195_p9), %s2503_s5, 1024, %s2508_s16, %s1391_s15, %s2118_s20, %s2118_s20, %s2119_s30  }
 0x260 PF: > { %s1421_s11 = sand.u32 1, %s2088_s12   ;;  %p2580_p3 = scmp.ge.s32.totalorder %s2108_s17, 2 }
 0x261   : > { %s1422_s18 = scalar_lea.sflag [#allocation4], %s1421_s11 }
 0x262   : > { %p1821_p4 = pnand %p2580_p3, %p2202_p11 }
 0x264   : > { %p1822_p10 = pneg %p1821_p4 }
 0x266   : > { %2083 = dma.done.wait (%p1822_p10), %s1422_s18, 1024  }
 0x267   : > { %2085 = vsyncadd (%p1822_p10), %s1422_s18, 4294966272  ;;  %s22_s17 = sadd.s32 1, %s2108_s17   ;;  %s2581_s25 = sld [smem:[#allocation14_spill]] }
 0x268   : > { %p19_p13 = scmp.ge.s32.totalorder %s22_s17, 4   ;;  %s2582_s15 = sld [smem:[#allocation12_spill]] }
 0x269   : > { %s2583_s16 = sld [smem:[#allocation13_spill]]  ;;  %s2584_s12 = smov %s2092_s13 }
 0x26a   : > { %s2585_s13 = smov %s2096_s14  ;;  %21 = sbr.rel (!%p19_p13) target bundleno = 10 (0xa), region = 101 }
 0x26d   : > { %s2586_s14 = smov %s2581_s25 }
 0x26f   :  { %1427 = vsyncpa [#allocation3], 1 }
 0x270   :  { %1429 = vsyncpa [#allocation3 + $0x1], 1 }
 0x271   :  { %1430 = vsyncpa [#allocation6], 1 }
 0x272   :  { %1432 = vsyncpa [#allocation6 + $0x1], 1 }
 0x273   :  { %1433 = vsyncpa [#allocation4], 1 }
 0x274   :  { %1435 = vsyncpa [#allocation4 + $0x1], 1 }

</bundles_post_ra>
